<compile_context>
chip_gen: v7x
topology: tpu7x:2x2x1
jax: 0.10.0
libtpu: 0.0.40
codegen_flags: <defaults>
</compile_context>

<pallas_src>
import functools

import jax
import jax.numpy as jnp
from jax.experimental import pallas as pl
from jax.experimental.pallas import tpu as pltpu


def _round_up(x: int, m: int) -> int:
    return ((x + m - 1) // m) * m


def _pick_tile(dim_padded: int, tile_max: int, quantum: int) -> int:
    """Largest multiple of `quantum` that divides `dim_padded` and is <= tile_max."""
    t = max(quantum, (min(tile_max, dim_padded) // quantum) * quantum)
    while dim_padded % t != 0:
        t -= quantum
    return t


def linear_kernel(x_ref, w_ref, b_ref, o_ref):
    # x_ref: (tm, tk) bf16   w_ref: (tk, tn) bf16 (pre-transposed weight)
    # b_ref: (1, tn) f32     o_ref: (tm, tn) f32 — resident across the k axis.
    k = pl.program_id(2)

    @pl.when(k == 0)
    def _():
        o_ref[...] = jnp.zeros_like(o_ref)

    # Plain (tm,tk)@(tk,tn) contraction: MXU consumes both tiles as laid out,
    # accumulating in f32 directly into the resident output block.
    o_ref[...] += jnp.dot(x_ref[...], w_ref[...],
                          preferred_element_type=jnp.float32)

    # Bias is added exactly once, on the final reduction step.
    @pl.when(k == pl.num_programs(2) - 1)
    def _():
        o_ref[...] += b_ref[...]


def prepare_linear_params(weight, bias, *, param_dtype=jnp.bfloat16, quantum=256):
    """One-time parameter prep (hoisted out of the forward path).

    weight: (C, D) -> (Dp, Cp) `param_dtype`, zero-padded, pre-transposed.
    bias:   (C,)   -> (1, Cp) f32, zero-padded.
    """
    C, D = weight.shape
    Cp = _round_up(C, quantum)
    Dp = _round_up(D, quantum)
    w_t = jnp.pad(weight.T.astype(param_dtype), ((0, Dp - D), (0, Cp - C)))
    b_p = jnp.pad(bias.astype(jnp.float32), (0, Cp - C)).reshape(1, Cp)
    return w_t, b_p


@functools.partial(
    jax.jit,
    static_argnames=("num_classes", "tn_max", "tk_max", "vmem_budget_bytes"),
)
def linear_forward(x, w_t, b_p, *, num_classes, tn_max=512, tk_max=512,
                   vmem_budget_bytes=24 * 1024 * 1024):
    """x: (B, D) any float dtype; w_t: (Dp, Cp) pre-prepared; b_p: (1, Cp) f32.

    Returns (B, num_classes) f32.
    """
    B, D = x.shape
    Dp, Cp = w_t.shape
    assert D <= Dp and num_classes <= Cp, (D, Dp, num_classes, Cp)

    in_dtype = w_t.dtype
    itemsize = jnp.dtype(in_dtype).itemsize

    # 256-multiple tiles: full 256x256 MXU utilization on v6e/v7x, lane-dense
    # unmasked stores, and still fine on v5e's 4x128x128 MXU.
    tn = _pick_tile(Cp, tn_max, 256)
    tk = _pick_tile(Dp, tk_max, 256)
    # Keep >= 2 output-column blocks when possible so the "parallel" j axis
    # can still split across the two TensorCores on v7x.
    if Cp // tn < 2 and Cp >= 2 * 256:
        tn = _pick_tile(Cp, Cp // 2, 256)

    # Size the batch tile against the VMEM budget so the weight matrix streams
    # from HBM as few times as possible (ideally once: tm == Bp).
    fixed = 2 * tk * tn * itemsize + 2 * tn * 4           # W double-buf + bias
    per_tm = 2 * tk * itemsize + 2 * tn * 4               # x double-buf + f32 out
    tm_cap = max(16, ((vmem_budget_bytes - fixed) // per_tm) // 16 * 16)
    tm = min(tm_cap, _round_up(B, 16))
    Bp = _round_up(B, tm)

    # Only the activations need per-call padding / casting (cheap vs W).
    x_p = jnp.pad(x.astype(in_dtype), ((0, Bp - B), (0, Dp - D)))

    gi, gj, gk = Bp // tm, Cp // tn, Dp // tk

    cost = pl.CostEstimate(
        flops=2 * Bp * Dp * Cp,
        transcendentals=0,
        bytes_accessed=(Bp * Dp * itemsize * gj     # x re-read per j block
                        + Dp * Cp * itemsize * gi   # W re-read per i block
                        + Cp * 4 * gi               # bias
                        + Bp * Cp * 4),             # output write
    )

    out_p = pl.pallas_call(
        linear_kernel,
        out_shape=jax.ShapeDtypeStruct((Bp, Cp), jnp.float32),
        grid_spec=pltpu.PrefetchScalarGridSpec(
            num_scalar_prefetch=0,
            grid=(gi, gj, gk),
            in_specs=[
                pl.BlockSpec((tm, tk), lambda i, j, k: (i, k)),   # x tile
                pl.BlockSpec((tk, tn), lambda i, j, k: (k, j)),   # W.T tile
                pl.BlockSpec((1, tn), lambda i, j, k: (0, j)),    # bias tile
            ],
            out_specs=pl.BlockSpec((tm, tn), lambda i, j, k: (i, j)),
        ),
        compiler_params=pltpu.CompilerParams(
            dimension_semantics=("parallel", "parallel", "arbitrary"),
            vmem_limit_bytes=32 * 1024 * 1024,
        ),
        cost_estimate=cost,
    )(x_p, w_t, b_p)

    return out_p[:B, :num_classes]


if __name__ == "__main__":
    batch, input_size, num_classes = 8, 32, 10

    key = jax.random.PRNGKey(0)
    kx, kw, kb = jax.random.split(key, 3)

    x = jax.random.normal(kx, (batch, input_size), dtype=jnp.float32)
    # Deterministic synthetic parameters (uniform, like torch's default init).
    bound = 1.0 / (input_size ** 0.5)
    weight = jax.random.uniform(
        kw, (num_classes, input_size), minval=-bound, maxval=bound,
        dtype=jnp.float32,
    )
    bias = jax.random.uniform(
        kb, (num_classes,), minval=-bound, maxval=bound, dtype=jnp.float32
    )

    # One-time parameter preparation (cast/pad/transpose hoisted out of forward).
    w_t, b_p = prepare_linear_params(weight, bias)

    out = linear_forward(x, w_t, b_p, num_classes=num_classes)
    out = jax.block_until_ready(out)
    assert out.shape == (batch, num_classes), out.shape

    # Reference with matching bf16 input rounding + f32 accumulation.
    xr = x.astype(jnp.bfloat16).astype(jnp.float32)
    wr = weight.astype(jnp.bfloat16).astype(jnp.float32)
    ref = xr @ wr.T + bias
    assert jnp.allclose(out, ref, atol=1e-4, rtol=1e-4), float(
        jnp.max(jnp.abs(out - ref)))

    # Loose sanity check against the full-precision reference as well.
    ref32 = x @ weight.T + bias
    assert jnp.allclose(out, ref32, atol=5e-2, rtol=5e-2), float(
        jnp.max(jnp.abs(out - ref32)))

    print("KERNEL_OK")
</pallas_src>

<mosaic_0001>
module attributes {stable_mosaic.version = 11 : i64} {
  func.func @linear_kernel(%arg0: i32, %arg1: i32, %arg2: i32, %arg3: memref<16x256xbf16, #tpu.memory_space<vmem>>, %arg4: memref<256x256xbf16, #tpu.memory_space<vmem>>, %arg5: memref<1x256xf32, #tpu.memory_space<vmem>>, %arg6: memref<16x256xf32, #tpu.memory_space<vmem>>) attributes {dimension_semantics = [#tpu.dimension_semantics<parallel>, #tpu.dimension_semantics<parallel>, #tpu.dimension_semantics<arbitrary>], iteration_bounds = array<i64: 1, 1, 1>, scalar_prefetch = 0 : i64, scratch_operands = 0 : i64, tpu.core_type = #tpu.core_type<tc>, window_params = [{transform_indices = @transform_0, window_bounds = array<i64: 16, 256>}, {transform_indices = @transform_1, window_bounds = array<i64: 256, 256>}, {transform_indices = @transform_2, window_bounds = array<i64: 1, 256>}, {transform_indices = @transform_3, window_bounds = array<i64: 16, 256>}]} {
    %c0_i32 = arith.constant 0 : i32
    %0 = arith.cmpi eq, %arg2, %c0_i32 : i32
    %1 = arith.extui %0 : i1 to i32
    %c0_i32_0 = arith.constant 0 : i32
    %2 = arith.cmpi ne, %1, %c0_i32_0 : i32
    scf.if %2 {
      %cst_10 = arith.constant 0.000000e+00 : f32
      %12 = vector.broadcast %cst_10 : f32 to vector<16x256xf32>
      %c0_11 = arith.constant 0 : index
      %c0_12 = arith.constant 0 : index
      %13 = vector.load %arg6[%c0_11, %c0_12] : memref<16x256xf32, #tpu.memory_space<vmem>>, vector<16x256xf32>
      tpu.vector_store %arg6[%c0_11, %c0_12], %12 {strides = array<i32>} : memref<16x256xf32, #tpu.memory_space<vmem>>, vector<16x256xf32>,
    } else {
    }
    %c0 = arith.constant 0 : index
    %c0_1 = arith.constant 0 : index
    %3 = vector.load %arg6[%c0, %c0_1] : memref<16x256xf32, #tpu.memory_space<vmem>>, vector<16x256xf32>
    %c0_2 = arith.constant 0 : index
    %c0_3 = arith.constant 0 : index
    %4 = vector.load %arg3[%c0_2, %c0_3] : memref<16x256xbf16, #tpu.memory_space<vmem>>, vector<16x256xbf16>
    %c0_4 = arith.constant 0 : index
    %c0_5 = arith.constant 0 : index
    %5 = vector.load %arg4[%c0_4, %c0_5] : memref<256x256xbf16, #tpu.memory_space<vmem>>, vector<256x256xbf16>
    %cst = arith.constant dense<0.000000e+00> : vector<16x256xf32>
    %6 = tpu.matmul %4, %5, %cst {dimension_numbers = #tpu.dot_dimension_numbers<[1], [0], [0], [1], [0, 0, 1, 1], [], []>} : vector<16x256xbf16>, vector<256x256xbf16>, vector<16x256xf32> -> vector<16x256xf32>
    %7 = arith.addf %3, %6 : vector<16x256xf32>
    %c0_6 = arith.constant 0 : index
    %c0_7 = arith.constant 0 : index
    %8 = vector.load %arg6[%c0_6, %c0_7] : memref<16x256xf32, #tpu.memory_space<vmem>>, vector<16x256xf32>
    tpu.vector_store %arg6[%c0_6, %c0_7], %7 {strides = array<i32>} : memref<16x256xf32, #tpu.memory_space<vmem>>, vector<16x256xf32>,
    %c0_i32_8 = arith.constant 0 : i32
    %9 = arith.cmpi eq, %arg2, %c0_i32_8 : i32
    %10 = arith.extui %9 : i1 to i32
    %c0_i32_9 = arith.constant 0 : i32
    %11 = arith.cmpi ne, %10, %c0_i32_9 : i32
    scf.if %11 {
      %c0_10 = arith.constant 0 : index
      %c0_11 = arith.constant 0 : index
      %12 = vector.load %arg6[%c0_10, %c0_11] : memref<16x256xf32, #tpu.memory_space<vmem>>, vector<16x256xf32>
      %c0_12 = arith.constant 0 : index
      %c0_13 = arith.constant 0 : index
      %13 = vector.load %arg5[%c0_12, %c0_13] : memref<1x256xf32, #tpu.memory_space<vmem>>, vector<1x256xf32>
      %14 = vector.broadcast %13 : vector<1x256xf32> to vector<16x256xf32>
      %15 = arith.addf %12, %14 : vector<16x256xf32>
      %c0_14 = arith.constant 0 : index
      %c0_15 = arith.constant 0 : index
      %16 = vector.load %arg6[%c0_14, %c0_15] : memref<16x256xf32, #tpu.memory_space<vmem>>, vector<16x256xf32>
      tpu.vector_store %arg6[%c0_14, %c0_15], %15 {strides = array<i32>} : memref<16x256xf32, #tpu.memory_space<vmem>>, vector<16x256xf32>,
    } else {
    }
    return
  }
  func.func @transform_0(%arg0: i32, %arg1: i32, %arg2: i32) -> (i32, i32) {
    %c0_i32 = arith.constant 0 : i32
    return %arg0, %arg2 : i32, i32
  }
  func.func @transform_1(%arg0: i32, %arg1: i32, %arg2: i32) -> (i32, i32) {
    %c0_i32 = arith.constant 0 : i32
    return %arg2, %arg1 : i32, i32
  }
  func.func @transform_2(%arg0: i32, %arg1: i32, %arg2: i32) -> (i32, i32) {
    %c0_i32 = arith.constant 0 : i32
    %c0_i32_0 = arith.constant 0 : i32
    return %c0_i32, %arg1 : i32, i32
  }
  func.func @transform_3(%arg0: i32, %arg1: i32, %arg2: i32) -> (i32, i32) {
    %c0_i32 = arith.constant 0 : i32
    return %arg0, %arg1 : i32, i32
  }
}

</mosaic_0001>

<bundles_post_ra>
// kernel: linear_forward.1
= control target key start
LH: loop header
LB: loop body
LE: loop exit
PB: predicated region body
PF: predicated region fallthrough
CT: control target
= control target key end

     0   :  { %8 = vsyncpa [#allocation3], 0  ;;  %s440_s12 = smov [#allocation2]   ;;  %s496_s0 = inlined_call_operand.vmem [shape: bf16[16,256], index: 0, kind: input, shape index: {}]   ;;  %s497_s1 = inlined_call_operand.hbm [shape: bf16[256,256], index: 1, kind: input, shape index: {}]   ;;  %s498_s2 = inlined_call_operand.vmem [shape: f32[1,256], index: 2, kind: input, shape index: {}]   ;;  %s499_s3 = inlined_call_operand.vmem [shape: f32[16,256], index: 3, kind: output, shape index: {}]  }
   0x1   :  { %s16_s13 = sshll.u32 %s440_s12, 4  ;;  %s416_s16 = scalar_lea.hbm %s497_s1, 4096  ;;  %s17_s13 = int_to_ptr.vmem [resolvable:$true] %s16_s13 }
   0x2   :  { %p417_p0 = scmp.ne.s32.totalorder %s497_s1, %s416_s16  ;;  %p420_p1 = scmp.lt.u32.totalorder %s416_s16, %s497_s1 }
   0x4   :  { %p422_p2 = pnand %p420_p1, %p417_p0 }
   0x6   :  { %425 = shalt.err (!%p422_p2)
}
   0x7   :  { %s426_s21 = scalar_lea.vmem %s17_s13, 4096  ;;  %p431_p4 = scmp.lt.s32.totalorder %s17_s13, %s17_s13 }
   0x8   :  { %p427_p3 = scmp.ne.s32.totalorder %s17_s13, %s426_s21  ;;  %p432_p5 = scmp.lt.s32.totalorder %s426_s21, %s426_s21 }
   0xa   :  { %p433_p6 = por %p432_p5, %p431_p4 }
   0xc   :  { %p434_p7 = pnand %p433_p6, %p427_p3 }
   0xe   :  { %437 = shalt.err (!%p434_p7)
}
   0xf   :  { %s441_s22 = smov 128   ;;  %s442_s23 = smov 8  }
  0x10   :  { %22 = dma.hbm_to_vmem [thread:$0]  %s497_s1, 4096, %s17_s13, [#allocation3], %s441_s22, %s441_s22, %s442_s23  }
  0x11   :  { %438 = dma.done.wait [#allocation3], 4096  }
  0x12   :  { %439 = vsyncadd [#allocation3], 4294963200  ;;  %v365_v0 = vld [vmem:[#allocation2 + $0x4] ss:$8 sps:$4 sm:$0xff]   ;;  %v367_v1 = vld [vmem:[#allocation2] ss:$8 sps:$4 sm:$0xff]   ;;  %v304_v34 = vlaneseq }
  0x13   :  { %244 = vmatprep.subr.bf16.mxu0 %v365_v0  ;;  %v368_v2 = vld [vmem:[#allocation2 + $0x14] ss:$8 sps:$4 sm:$0xff]   ;;  %v370_v3 = vld [vmem:[#allocation2 + $0x10] ss:$8 sps:$4 sm:$0xff]   ;;  %v371_v4 = vld [vmem:[#allocation2 + $0x24] ss:$8 sps:$4 sm:$0xff]  }
  0x14   :  { %245 = vmatpush1.bf16.msra.mxu0 %v367_v1  ;;  %v373_v5 = vld [vmem:[#allocation2 + $0x20] ss:$8 sps:$4 sm:$0xff]   ;;  %v374_v6 = vld [vmem:[#allocation2 + $0x34] ss:$8 sps:$4 sm:$0xff]   ;;  %v376_v7 = vld [vmem:[#allocation2 + $0x30] ss:$8 sps:$4 sm:$0xff]  }
  0x15   :  { %246 = vmatprep.subr.bf16.mxu0 %v368_v2  ;;  %v377_v8 = vld [vmem:[#allocation2 + $0x44] ss:$8 sps:$4 sm:$0xff]   ;;  %v379_v9 = vld [vmem:[#allocation2 + $0x40] ss:$8 sps:$4 sm:$0xff]   ;;  %v380_v10 = vld [vmem:[#allocation2 + $0x54] ss:$8 sps:$4 sm:$0xff]  }
  0x16   :  { %v382_v11 = vld [vmem:[#allocation2 + $0x50] ss:$8 sps:$4 sm:$0xff]   ;;  %v383_v12 = vld [vmem:[#allocation2 + $0x64] ss:$8 sps:$4 sm:$0xff]   ;;  %v385_v14 = vld [vmem:[#allocation2 + $0x60] ss:$8 sps:$4 sm:$0xff]  }
  0x17   :  { %v415_v13 = vld [vmem:[%s496_s0 + $0x4] ss:$8 sps:$4 sm:$0xff]   ;;  %v386_v15 = vld [vmem:[#allocation2 + $0x74] ss:$8 sps:$4 sm:$0xff]   ;;  %v388_v16 = vld [vmem:[#allocation2 + $0x70] ss:$8 sps:$4 sm:$0xff]  }
  0x18   :  { %247 = vmatpush1.bf16.msra.mxu0 %v370_v3  ;;  %276 = vmatprep.mubr.bf16.mxu0 %v415_v13  ;;  %v389_v17 = vld [vmem:[#allocation2 + $0x84] ss:$8 sps:$4 sm:$0xff]   ;;  %v391_v18 = vld [vmem:[#allocation2 + $0x80] ss:$8 sps:$4 sm:$0xff]   ;;  %v392_v19 = vld [vmem:[#allocation2 + $0x94] ss:$8 sps:$4 sm:$0xff]  }
  0x19   :  { %248 = vmatprep.subr.bf16.mxu0 %v371_v4  ;;  %v394_v20 = vld [vmem:[#allocation2 + $0x90] ss:$8 sps:$4 sm:$0xff]   ;;  %v395_v21 = vld [vmem:[#allocation2 + $0xa4] ss:$8 sps:$4 sm:$0xff]   ;;  %v397_v22 = vld [vmem:[#allocation2 + $0xa0] ss:$8 sps:$4 sm:$0xff]  }
  0x1a   :  { %v398_v23 = vld [vmem:[#allocation2 + $0xb4] ss:$8 sps:$4 sm:$0xff]   ;;  %v400_v24 = vld [vmem:[#allocation2 + $0xb0] ss:$8 sps:$4 sm:$0xff]   ;;  %v401_v25 = vld [vmem:[#allocation2 + $0xc4] ss:$8 sps:$4 sm:$0xff]  }
  0x1b   :  { %v403_v26 = vld [vmem:[#allocation2 + $0xc0] ss:$8 sps:$4 sm:$0xff]   ;;  %v404_v27 = vld [vmem:[#allocation2 + $0xd4] ss:$8 sps:$4 sm:$0xff]   ;;  %v406_v28 = vld [vmem:[#allocation2 + $0xd0] ss:$8 sps:$4 sm:$0xff]  }
  0x1c   :  { %249 = vmatpush1.bf16.msra.mxu0 %v373_v5  ;;  %v407_v29 = vld [vmem:[#allocation2 + $0xe4] ss:$8 sps:$4 sm:$0xff]   ;;  %v409_v30 = vld [vmem:[#allocation2 + $0xe0] ss:$8 sps:$4 sm:$0xff]   ;;  %v410_v31 = vld [vmem:[#allocation2 + $0xf4] ss:$8 sps:$4 sm:$0xff]  }
  0x1d   :  { %250 = vmatprep.subr.bf16.mxu0 %v374_v6  ;;  %v412_v32 = vld [vmem:[#allocation2 + $0xf0] ss:$8 sps:$4 sm:$0xff]   ;;  %v413_v33 = vld [vmem:[%s496_s0] ss:$8 sps:$4 sm:$0xff]   ;;  %v305_v35 = vshrl.u32 %v304_v34, 7 }
  0x1e   :  { %v302_v37 = vld [vmem:[%s498_s2] sm:$0x3] }
  0x1f   :  { %v306_v36 = vsub.s32 0, %v305_v35  ;;  %v310_v38 = vsub.s32 1, %v305_v35 }
  0x20   :  { %251 = vmatpush1.bf16.msra.mxu0 %v376_v7 }
  0x21   :  { %252 = vmatprep.subr.bf16.mxu0 %v377_v8  ;;  %v307_v39 = vrot.slane %v302_v37, %v306_v36  ;;  %v311_v41 = vrot.slane %v302_v37, %v310_v38 }
  0x24   :  { %253 = vmatpush1.bf16.msra.mxu0 %v379_v9 }
  0x25   :  { %254 = vmatprep.subr.bf16.mxu0 %v380_v10 }
  0x28   :  { %255 = vmatpush1.bf16.msra.mxu0 %v382_v11 }
  0x29   :  { %256 = vmatprep.subr.bf16.mxu0 %v383_v12 }
  0x2c   :  { %257 = vmatpush1.bf16.msra.mxu0 %v385_v14 }
  0x2d   :  { %258 = vmatprep.subr.bf16.mxu0 %v386_v15 }
  0x30   :  { %259 = vmatpush1.bf16.msra.mxu0 %v388_v16 }
  0x31   :  { %260 = vmatprep.subr.bf16.mxu0 %v389_v17 }
  0x34   :  { %261 = vmatpush1.bf16.msra.mxu0 %v391_v18 }
  0x35   :  { %262 = vmatprep.subr.bf16.mxu0 %v392_v19 }
  0x38   :  { %263 = vmatpush1.bf16.msra.mxu0 %v394_v20 }
  0x39   :  { %264 = vmatprep.subr.bf16.mxu0 %v395_v21 }
  0x3c   :  { %265 = vmatpush1.bf16.msra.mxu0 %v397_v22 }
  0x3d   :  { %266 = vmatprep.subr.bf16.mxu0 %v398_v23 }
  0x40   :  { %267 = vmatpush1.bf16.msra.mxu0 %v400_v24 }
  0x41   :  { %268 = vmatprep.subr.bf16.mxu0 %v401_v25 }
  0x44   :  { %269 = vmatpush1.bf16.msra.mxu0 %v403_v26 }
  0x45   :  { %270 = vmatprep.subr.bf16.mxu0 %v404_v27 }
  0x48   :  { %271 = vmatpush1.bf16.msra.mxu0 %v406_v28 }
  0x49   :  { %272 = vmatprep.subr.bf16.mxu0 %v407_v29 }
  0x4c   :  { %273 = vmatpush1.bf16.msra.mxu0 %v409_v30 }
  0x4d   :  { %274 = vmatprep.subr.bf16.mxu0 %v410_v31 }
  0x50   :  { %275 = vmatpush1.bf16.msra.mxu0 %v412_v32 }
  0x53   :  { %277 = vmatmul.mubr.bf16.vlgmr.msra.gmra.mrb[0].mxu0 %v413_v33 }
 0x126   :  { %v278_v40 = vpop.f32.mrb[0].mxu0 }
 0x127   :  { %v280_v42 = vpop.f32.mrb[1].mxu0  ;;  %v314_v44 = vadd.f32 %v307_v39, %v278_v40 }
 0x128   :  { %v282_v43 = vpop.f32.mrb[2].mxu0  ;;  %v315_v46 = vadd.f32 %v311_v41, %v280_v42 }
 0x129   :  { %v284_v45 = vpop.f32.mrb[3].mxu0  ;;  %318 = vst [vmem:[%s499_s3] sm:$0xff] %v314_v44  ;;  %v316_v47 = vadd.f32 %v307_v39, %v282_v43 }
 0x12a   :  { %319 = vst [vmem:[%s499_s3 + $0x8] sm:$0xff] %v315_v46  ;;  %v317_v48 = vadd.f32 %v311_v41, %v284_v45 }
 0x12b   :  { %320 = vst [vmem:[%s499_s3 + $0x10] sm:$0xff] %v316_v47 }
 0x12c   :  { %321 = vst [vmem:[%s499_s3 + $0x18] sm:$0xff] %v317_v48 }
 0x12d   :  { %326 = vsyncpa [#allocation3], 1 }

</bundles_post_ra>
